<compile_context>
chip_gen: v7x
topology: tpu7x:2x2x1
jax: 0.10.0
libtpu: 0.0.40
codegen_flags: <defaults>
</compile_context>

<pallas_src>
from functools import partial

import jax
import jax.numpy as jnp
from jax import lax
from jax.experimental import pallas as pl
from jax.experimental.pallas import tpu as pltpu

EPS = 1e-12  # F.normalize default eps


# ---------------------------------------------------------------------------
# Kernel 1: spectral-norm power iteration -> sigma (plus updated u, v).
#   w_ref : (O, K)   u_ref : (1, O)   v_ref : (1, K)      (all f32, VMEM)
#   sigma_ref : (1, 1)   u_out_ref : (1, O)   v_out_ref : (1, K)
# Matvecs go through the MXU (jnp.dot / dot_general); normalization uses
# lax.rsqrt (EUP).  u is kept as a lane-dense (1, O) row vector.
# ---------------------------------------------------------------------------
def _power_iter_kernel(w_ref, u_ref, v_ref, sigma_ref, u_out_ref, v_out_ref,
                       *, power_iterations):
    w = w_ref[...]                      # (O, K)
    u = u_ref[...]                      # (1, O)
    v = v_ref[...]                      # (1, K)
    for _ in range(power_iterations):   # static unroll (power_iterations is trace-time const)
        # v = normalize(W^T u)
        wtu = jnp.dot(u, w, preferred_element_type=jnp.float32)          # (1, K)
        v = wtu * lax.rsqrt(jnp.maximum(jnp.sum(wtu * wtu), EPS * EPS))
        # u = normalize(W v)
        wv = lax.dot_general(v, w, (((1,), (1,)), ((), ())),
                             preferred_element_type=jnp.float32)          # (1, O)
        u = wv * lax.rsqrt(jnp.maximum(jnp.sum(wv * wv), EPS * EPS))
    # sigma = u . (W v) — recomputed with the final v so that
    # power_iterations=0 still yields PyTorch's sigma from the stored u, v.
    wv = lax.dot_general(v, w, (((1,), (1,)), ((), ())),
                         preferred_element_type=jnp.float32)              # (1, O)
    sigma_ref[...] = jnp.sum(u * wv, keepdims=True)                       # (1, 1)
    u_out_ref[...] = u
    v_out_ref[...] = v


# ---------------------------------------------------------------------------
# Kernel 2: tiled conv GEMM with fused 1/sigma scale + bias epilogue.
#   grid = (N, HW // m_blk, K // k_blk)  semantics ("parallel","parallel","arbitrary")
#   sigma_ref : (1, 1) f32       w_ref : (O, k_blk) bf16
#   p_ref     : (k_blk, m_blk) bf16 (batch dim squeezed)
#   b_ref     : (O, 1) f32       o_ref : (O, m_blk) f32 (lane-dense, NHW on lanes)
#   acc_ref   : (O, m_blk) f32 VMEM scratch accumulator
# ---------------------------------------------------------------------------
def _conv_gemm_kernel(sigma_ref, w_ref, p_ref, b_ref, o_ref, acc_ref):
    @pl.when(pl.program_id(2) == 0)
    def _init():
        acc_ref[...] = jnp.zeros_like(acc_ref)

    # (O, k_blk) @ (k_blk, m_blk) -> (O, m_blk), bf16 inputs, f32 accumulation.
    acc_ref[...] += lax.dot_general(
        w_ref[...], p_ref[...],
        dimension_numbers=(((1,), (0,)), ((), ())),
        preferred_element_type=jnp.float32)

    @pl.when(pl.program_id(2) == pl.num_programs(2) - 1)
    def _finalize():
        inv_sigma = 1.0 / sigma_ref[...]                      # (1, 1), broadcast
        o_ref[...] = (acc_ref[...] * inv_sigma + b_ref[...]).astype(o_ref.dtype)


def _pick_tile(dim, candidates=(512, 256, 128)):
    """Largest candidate tile that divides `dim`; else the full dim.

    Capped at 512 so the double-buffered working set stays within a few MiB,
    which fits comfortably in v7x's 64 MiB VMEM (and v5e's 16 MiB default
    scoped limit) while still amortizing per-step pipeline overhead.
    """
    for c in candidates:
        if dim % c == 0:
            return c
    return dim


def spectral_norm_conv2d(x, w, b, u, v, *, power_iterations=1):
    """Forward of SpectralNorm(nn.Conv2d(C, O, k, stride=1, padding=k//2)).

    Returns (y_nchw, u_new, v_new, sigma).  `power_iterations` must be a
    static Python int (it is unrolled at trace time).
    """
    O, C, kh, kw = w.shape
    K = C * kh * kw
    N, _, H, W = x.shape
    HW = H * W

    w_flat = w.reshape(O, K).astype(jnp.float32)

    # ---- Pallas kernel 1: power iteration -> sigma, u, v ----
    sigma, u_new, v_new = pl.pallas_call(
        partial(_power_iter_kernel, power_iterations=power_iterations),
        out_shape=(jax.ShapeDtypeStruct((1, 1), jnp.float32),
                   jax.ShapeDtypeStruct((1, O), jnp.float32),
                   jax.ShapeDtypeStruct((1, K), jnp.float32)),
        in_specs=[pl.BlockSpec(memory_space=pltpu.MemorySpace.VMEM)] * 3,
        out_specs=(pl.BlockSpec(memory_space=pltpu.MemorySpace.VMEM),) * 3,
    )(w_flat, u.reshape(1, O), v.reshape(1, K))

    # ---- im2col (single fused XLA op; feature order = (C, kh, kw) row-major,
    #      matching w.view(O, C*kh*kw)); result already in (N, K, HW) layout ----
    ph, pw = kh // 2, kw // 2
    patches = lax.conv_general_dilated_patches(
        x.astype(jnp.float32), (kh, kw), (1, 1),
        padding=((ph, ph), (pw, pw)),
        dimension_numbers=('NCHW', 'OIHW', 'NCHW'))          # (N, K, H, W)
    patches = patches.reshape(N, K, HW).astype(jnp.bfloat16)  # bf16 MXU inputs
    w_bf16 = w_flat.astype(jnp.bfloat16)
    b_col = b.reshape(O, 1).astype(jnp.float32)

    m_blk = _pick_tile(HW)
    k_blk = _pick_tile(K)
    grid = (N, HW // m_blk, K // k_blk)

    # ---- Pallas kernel 2: tiled GEMM + (1/sigma) * . + bias, output (N,O,HW) ----
    out = pl.pallas_call(
        _conv_gemm_kernel,
        out_shape=jax.ShapeDtypeStruct((N, O, HW), jnp.float32),
        grid=grid,
        in_specs=[
            pl.BlockSpec((1, 1), lambda n, m, k: (0, 0)),                    # sigma
            pl.BlockSpec((O, k_blk), lambda n, m, k: (0, k)),                # weight
            pl.BlockSpec((None, k_blk, m_blk), lambda n, m, k: (n, k, m)),   # patches
            pl.BlockSpec((O, 1), lambda n, m, k: (0, 0)),                    # bias
        ],
        out_specs=pl.BlockSpec((None, O, m_blk), lambda n, m, k: (n, 0, m)),
        scratch_shapes=[pltpu.VMEM((O, m_blk), jnp.float32)],
        compiler_params=pltpu.CompilerParams(
            dimension_semantics=("parallel", "parallel", "arbitrary"),
            vmem_limit_bytes=64 * 1024 * 1024),
    )(sigma, w_bf16, patches, b_col)

    y = out.reshape(N, O, H, W)          # already NCHW — no transpose needed
    return y, u_new.reshape(O), v_new.reshape(K), sigma.reshape(())


def _reference(x, w, b, u, v, power_iterations=1):
    """Pure-JAX reference of the same forward pass (for sanity checking)."""
    O = w.shape[0]
    kh, kw = w.shape[2], w.shape[3]
    w_flat = w.reshape(O, -1).astype(jnp.float32)
    for _ in range(power_iterations):
        v = w_flat.T @ u
        v = v / jnp.maximum(jnp.linalg.norm(v), EPS)
        u = w_flat @ v
        u = u / jnp.maximum(jnp.linalg.norm(u), EPS)
    sigma = u @ (w_flat @ v)
    w_sn = w / sigma
    y = lax.conv_general_dilated(
        x, w_sn, window_strides=(1, 1),
        padding=((kh // 2, kh // 2), (kw // 2, kw // 2)),
        dimension_numbers=('NCHW', 'OIHW', 'NCHW'))
    return y + b[None, :, None, None], sigma


if __name__ == "__main__":
    # SpectralNorm(nn.Conv2d(4, 8, kernel_size=3, stride=1, padding=1))
    N, C, H, W = 2, 4, 16, 16
    O, k = 8, 3
    K = C * k * k

    key = jax.random.PRNGKey(0)
    kx, kw_, kb, ku, kv = jax.random.split(key, 5)

    x = jax.random.normal(kx, (N, C, H, W), dtype=jnp.float32)
    w = jax.random.normal(kw_, (O, C, k, k), dtype=jnp.float32) * 0.1
    b = jax.random.normal(kb, (O,), dtype=jnp.float32) * 0.01
    u0 = jax.random.normal(ku, (O,), dtype=jnp.float32)
    v0 = jax.random.normal(kv, (K,), dtype=jnp.float32)
    u0 = u0 / jnp.maximum(jnp.linalg.norm(u0), EPS)
    v0 = v0 / jnp.maximum(jnp.linalg.norm(v0), EPS)

    y, u_new, v_new, sigma = spectral_norm_conv2d(x, w, b, u0, v0,
                                                  power_iterations=1)
    y = jax.block_until_ready(y)

    y_ref, sigma_ref = _reference(x, w, b, u0, v0, power_iterations=1)

    # The GEMM feeds the MXU with bf16 inputs (f32 accumulation), so compare
    # with a scale-relative bound rather than a tight element-wise allclose.
    err = float(jnp.max(jnp.abs(y - y_ref)) / (jnp.max(jnp.abs(y_ref)) + 1e-6))
    assert err < 2e-2, f"conv output mismatch vs reference: rel-max err {err}"
    assert abs(float(sigma) - float(sigma_ref)) < 1e-2 * abs(float(sigma_ref)) + 1e-4, \
        "sigma mismatch vs reference"
    assert abs(float(jnp.linalg.norm(u_new)) - 1.0) < 1e-3, "u not unit norm"
    assert abs(float(jnp.linalg.norm(v_new)) - 1.0) < 1e-3, "v not unit norm"

    print("KERNEL_OK")
</pallas_src>

<mosaic_0001>
module attributes {stable_mosaic.version = 11 : i64} {
  func.func @_power_iter_kernel(%arg0: memref<8x36xf32, #tpu.memory_space<vmem>>, %arg1: memref<1x8xf32, #tpu.memory_space<vmem>>, %arg2: memref<1x36xf32, #tpu.memory_space<vmem>>, %arg3: memref<1x1xf32, #tpu.memory_space<vmem>>, %arg4: memref<1x8xf32, #tpu.memory_space<vmem>>, %arg5: memref<1x36xf32, #tpu.memory_space<vmem>>) attributes {dimension_semantics = [], scalar_prefetch = 0 : i64, scratch_operands = 0 : i64, tpu.core_type = #tpu.core_type<tc>} {
    %c0 = arith.constant 0 : index
    %c0_0 = arith.constant 0 : index
    %0 = vector.load %arg0[%c0, %c0_0] : memref<8x36xf32, #tpu.memory_space<vmem>>, vector<8x36xf32>
    %c0_1 = arith.constant 0 : index
    %c0_2 = arith.constant 0 : index
    %1 = vector.load %arg1[%c0_1, %c0_2] : memref<1x8xf32, #tpu.memory_space<vmem>>, vector<1x8xf32>
    %cst = arith.constant dense<0.000000e+00> : vector<1x36xf32>
    %2 = tpu.matmul %1, %0, %cst {dimension_numbers = #tpu.dot_dimension_numbers<[1], [0], [0], [1], [0, 0, 1, 1], [], []>} : vector<1x8xf32>, vector<8x36xf32>, vector<1x36xf32> -> vector<1x36xf32>
    %3 = arith.mulf %2, %2 : vector<1x36xf32>
    %4 = vector.shape_cast %3 : vector<1x36xf32> to vector<1x1x36xf32>
    %cst_3 = arith.constant dense<0.000000e+00> : vector<1xf32>
    %5 = vector.multi_reduction <add>, %4, %cst_3 [1, 2] : vector<1x1x36xf32> to vector<1xf32>
    %6 = vector.shape_cast %5 : vector<1xf32> to vector<1x1x1xf32>
    %7 = vector.extract %6[0, 0, 0] : f32 from vector<1x1x1xf32>
    %cst_4 = arith.constant 1.000000e-24 : f32
    %8 = arith.maximumf %7, %cst_4 : f32
    %9 = math.rsqrt %8 : f32
    %10 = vector.broadcast %9 : f32 to vector<1x36xf32>
    %11 = arith.mulf %2, %10 : vector<1x36xf32>
    %cst_5 = arith.constant dense<0.000000e+00> : vector<1x8xf32>
    %12 = tpu.matmul %11, %0, %cst_5 {dimension_numbers = #tpu.dot_dimension_numbers<[1], [1], [0], [0], [0, 0, 1, 0], [], []>} : vector<1x36xf32>, vector<8x36xf32>, vector<1x8xf32> -> vector<1x8xf32>
    %13 = arith.mulf %12, %12 : vector<1x8xf32>
    %14 = vector.shape_cast %13 : vector<1x8xf32> to vector<1x1x8xf32>
    %cst_6 = arith.constant dense<0.000000e+00> : vector<1xf32>
    %15 = vector.multi_reduction <add>, %14, %cst_6 [1, 2] : vector<1x1x8xf32> to vector<1xf32>
    %16 = vector.shape_cast %15 : vector<1xf32> to vector<1x1x1xf32>
    %17 = vector.extract %16[0, 0, 0] : f32 from vector<1x1x1xf32>
    %cst_7 = arith.constant 1.000000e-24 : f32
    %18 = arith.maximumf %17, %cst_7 : f32
    %19 = math.rsqrt %18 : f32
    %20 = vector.broadcast %19 : f32 to vector<1x8xf32>
    %21 = arith.mulf %12, %20 : vector<1x8xf32>
    %cst_8 = arith.constant dense<0.000000e+00> : vector<1x8xf32>
    %22 = tpu.matmul %11, %0, %cst_8 {dimension_numbers = #tpu.dot_dimension_numbers<[1], [1], [0], [0], [0, 0, 1, 0], [], []>} : vector<1x36xf32>, vector<8x36xf32>, vector<1x8xf32> -> vector<1x8xf32>
    %23 = arith.mulf %21, %22 : vector<1x8xf32>
    %24 = vector.shape_cast %23 : vector<1x8xf32> to vector<1x1x8xf32>
    %cst_9 = arith.constant dense<0.000000e+00> : vector<1xf32>
    %25 = vector.multi_reduction <add>, %24, %cst_9 [1, 2] : vector<1x1x8xf32> to vector<1xf32>
    %26 = vector.shape_cast %25 : vector<1xf32> to vector<1x1x1xf32>
    %27 = vector.extract %26[0, 0, 0] : f32 from vector<1x1x1xf32>
    %28 = vector.broadcast %27 : f32 to vector<1x1xf32>
    %c0_10 = arith.constant 0 : index
    %c0_11 = arith.constant 0 : index
    %29 = vector.load %arg3[%c0_10, %c0_11] : memref<1x1xf32, #tpu.memory_space<vmem>>, vector<1x1xf32>
    tpu.vector_store %arg3[%c0_10, %c0_11], %28 {strides = array<i32>} : memref<1x1xf32, #tpu.memory_space<vmem>>, vector<1x1xf32>,
    %c0_12 = arith.constant 0 : index
    %c0_13 = arith.constant 0 : index
    %30 = vector.load %arg4[%c0_12, %c0_13] : memref<1x8xf32, #tpu.memory_space<vmem>>, vector<1x8xf32>
    tpu.vector_store %arg4[%c0_12, %c0_13], %21 {strides = array<i32>} : memref<1x8xf32, #tpu.memory_space<vmem>>, vector<1x8xf32>,
    %c0_14 = arith.constant 0 : index
    %c0_15 = arith.constant 0 : index
    %31 = vector.load %arg5[%c0_14, %c0_15] : memref<1x36xf32, #tpu.memory_space<vmem>>, vector<1x36xf32>
    tpu.vector_store %arg5[%c0_14, %c0_15], %11 {strides = array<i32>} : memref<1x36xf32, #tpu.memory_space<vmem>>, vector<1x36xf32>,
    return
  }
}

</mosaic_0001>

<bundles_post_ra>
// kernel: tpu_custom_call.1
= control target key start
LH: loop header
LB: loop body
LE: loop exit
PB: predicated region body
PF: predicated region fallthrough
CT: control target
= control target key end

     0   :  { %11 = vsyncpa [#allocation3], 0  ;;  %s505_s0 = inlined_call_operand.hbm [shape: f32[8,36], index: 0, kind: input, shape index: {}]   ;;  %s506_s1 = inlined_call_operand.vmem [shape: f32[1,8], index: 1, kind: input, shape index: {}]   ;;  %s507_s2 = inlined_call_operand.vmem [shape: f32[1,36], index: 2, kind: input, shape index: {}]   ;;  %s508_s3 = inlined_call_operand.hbm [shape: f32[1,1], index: 3, kind: output, shape index: {0}]   ;;  %s509_s4 = inlined_call_operand.hbm [shape: f32[1,8], index: 4, kind: output, shape index: {1}]   ;;  %s510_s5 = inlined_call_operand.hbm [shape: f32[1,36], index: 5, kind: output, shape index: {2}]  }
   0x1   :  { %12 = vsyncpa [#allocation4], 0 }
   0x2   :  { %13 = vsyncpa [#allocation7], 0  ;;  %s410_s18 = smov [#allocation2]   ;;  %s316_s22 = scalar_lea.hbm %s505_s0, 128 }
   0x3   :  { %s20_s19 = sshll.u32 %s410_s18, 4  ;;  %p317_p0 = scmp.ne.s32.totalorder %s505_s0, %s316_s22  ;;  %s21_s19 = int_to_ptr.vmem [resolvable:$true] %s20_s19 }
   0x4   :  { %p320_p1 = scmp.lt.u32.totalorder %s316_s22, %s505_s0 }
   0x6   :  { %p322_p2 = pnand %p320_p1, %p317_p0 }
   0x8   :  { %325 = shalt.err (!%p322_p2)
}
   0x9   :  { %s326_s26 = scalar_lea.vmem %s21_s19, 128  ;;  %p331_p4 = scmp.lt.s32.totalorder %s21_s19, %s21_s19 }
   0xa   :  { %p327_p3 = scmp.ne.s32.totalorder %s21_s19, %s326_s26  ;;  %p332_p5 = scmp.lt.s32.totalorder %s326_s26, %s326_s26 }
   0xc   :  { %p333_p6 = por %p332_p5, %p331_p4 }
   0xe   :  { %p334_p7 = pnand %p333_p6, %p327_p3 }
  0x10   :  { %337 = shalt.err (!%p334_p7)
}
  0x11   :  { %23 = dma.hbm_to_vmem [thread:$0]  %s505_s0, 128, %s21_s19, [#allocation3]  }
  0x12   :  { %404 = dma.done.wait [#allocation3], 128  }
  0x13   :  { %405 = vsyncadd [#allocation3], 4294967168  ;;  %v411_v0 = vmov 0.0   ;;  %vm412_vm0 = vmmov 0   ;;  %vm33_vm1 = vcmask 64512   ;;  %v31_v1 = vld [vmem:[#allocation2] sm:$0xff] }
  0x14   :  { %285 = vmatprep.subr.mxu0 %v411_v0  ;;  %287 = vmatprep.mubr.msk.f32.mxu0 %vm412_vm0, %v411_v0  ;;  %v32_v2 = vld [vmem:[%s506_s1] sm:$0x1]  ;;  %vm108_vm2 = vcmask 286720   ;;  %vm125_vm3 = vcmask 293888   ;;  %s413_s1 = smov 1e-24  }
  0x15   :  { %290 = vmatprep.subr.mxu1 %v411_v0  ;;  %292 = vmatprep.mubr.msk.f32.mxu1 %vm412_vm0, %v411_v0  ;;  %vm203_vm4 = vcmask 57344   ;;  %s414_s11 = smov [#allocation6]  }
  0x16   :  { %286 = vmatpush3.msra.mxu0 %v31_v1  ;;  %291 = vmatpush3.xpose.msk.msra.mxu1 %vm125_vm3, %v31_v1  ;;  %s252_s12 = sshll.u32 %s414_s11, 4  ;;  %s253_s12 = int_to_ptr.vmem [resolvable:$true] %s252_s12 }
  0x17   :  { %288 = vmatmul.mubr.msk.f32.vlgmr.msra.gmra.mrb[0].mxu0 %vm33_vm1, %v32_v2  ;;  %s338_s13 = scalar_lea.vmem %s253_s12, 16  ;;  %s342_s14 = scalar_lea.vmem %s253_s12, 32 }
  0x18   :  { %p339_p8 = scmp.ne.s32.totalorder %s253_s12, %s338_s13  ;;  %p343_p9 = scmp.lt.s32.totalorder %s253_s12, %s253_s12 }
  0x19   :  { %p344_p10 = scmp.lt.s32.totalorder %s342_s14, %s338_s13 }
  0x1b   :  { %p345_p11 = por %p344_p10, %p343_p9 }
  0x1d   :  { %p346_p12 = pnand %p345_p11, %p339_p8 }
  0xea   :  { %v103_v3 = vpop.f32.mrb[0].mxu0 }
  0xeb   :  { %v289_v4 = vpop.f32.mrb[1].mxu0  ;;  %v107_v5 = vmul.f32 %v103_v3, %v103_v3 }
  0xed   :  { %v109_v6 = vsel %vm108_vm2, %v107_v5, 0.0 }
  0xee   :  { %110 = vadd.xlane.f32.xlu0 %v109_v6 }
 0x17b   :  { %v111_v7 = vpop.xlane.xlu0 %110 }
 0x17c   :  { %v112_v8 = vrot.slane %v111_v7, 4 }
 0x17e   :  { %v113_v9 = vadd.f32 %v112_v8, %v111_v7 }
 0x180   :  { %v114_v10 = vrot.slane %v113_v9, 2 }
 0x182   :  { %v115_v11 = vadd.f32 %v114_v10, %v113_v9 }
 0x184   :  { %v116_v12 = vrot.slane %v115_v11, 1 }
 0x186   :  { %v117_v13 = vadd.f32 %v116_v12, %v115_v11 }
 0x188   :  { %295 = vpush %v117_v13 }
 0x1b9   :  { %s296_s0 = spop %295 }
 0x1ba   :  { %s119_s6 = smax.f32 %s413_s1, %s296_s0 }
 0x1bb   :  { %v120_v14 = vstv %s119_s6 }
 0x1bc   :  { %312 = vrsqrt.f32 %v120_v14 }
 0x1c6   :  { %v313_v15 = vpop.eup %312 }
 0x1c7   :  { %297 = vpush %v313_v15 }
 0x1f8   :  { %s298_s7 = spop %297 }
 0x1f9   :  { %v123_v16 = vstv %s298_s7 }
 0x1fa   :  { %v124_v17 = vmul.f32 %v123_v16, %v103_v3 }
 0x1fc   :  { %235 = vst.msk [vmem:[#allocation8] sm:$0x1] %vm108_vm2, %v124_v17  ;;  %293 = vmatmul.mubr.msk.f32.vlgmr.msra.gmra.mrb[0].mxu1 %vm125_vm3, %v124_v17 }
 0x2cf   :  { %v198_v18 = vpop.f32.mrb[0].mxu1 }
 0x2d0   :  { %v294_v19 = vpop.f32.mrb[1].mxu1  ;;  %v202_v20 = vmul.f32 %v198_v18, %v198_v18 }
 0x2d2   :  { %v204_v21 = vsel %vm203_vm4, %v202_v20, 0.0 }
 0x2d3   :  { %205 = vadd.xlane.f32.xlu0 %v204_v21 }
 0x360   :  { %v206_v22 = vpop.xlane.xlu0 %205 }
 0x361   :  { %v207_v23 = vrot.slane %v206_v22, 4 }
 0x363   :  { %v208_v24 = vadd.f32 %v207_v23, %v206_v22 }
 0x365   :  { %v209_v25 = vrot.slane %v208_v24, 2 }
 0x367   :  { %v210_v26 = vadd.f32 %v209_v25, %v208_v24 }
 0x369   :  { %v211_v27 = vrot.slane %v210_v26, 1 }
 0x36b   :  { %v212_v28 = vadd.f32 %v211_v27, %v210_v26 }
 0x36d   :  { %299 = vpush %v212_v28 }
 0x39e   :  { %s300_s8 = spop %299 }
 0x39f   :  { %s214_s9 = smax.f32 %s413_s1, %s300_s8 }
 0x3a0   :  { %v215_v29 = vstv %s214_s9 }
 0x3a1   :  { %314 = vrsqrt.f32 %v215_v29 }
 0x3ab   :  { %v315_v30 = vpop.eup %314 }
 0x3ac   :  { %301 = vpush %v315_v30 }
 0x3dd   :  { %s302_s10 = spop %301 }
 0x3de   :  { %v218_v31 = vstv %s302_s10 }
 0x3df   :  { %v219_v32 = vmul.f32 %v218_v31, %v198_v18 }
 0x3e1   :  { %234 = vst.msk [vmem:[#allocation6] sm:$0x1] %vm203_vm4, %v219_v32  ;;  %v220_v33 = vmul.f32 %v219_v32, %v198_v18 }
 0x3e3   :  { %v221_v34 = vsel %vm203_vm4, %v220_v33, 0.0 }
 0x3e4   :  { %222 = vadd.xlane.f32.xlu1 %v221_v34 }
 0x3e5   :  { %349 = shalt.err (!%p346_p12)
}
 0x3e6   :  { %s350_s17 = scalar_lea.hbm %s509_s4, 16 }
 0x3e7   :  { %p351_p13 = scmp.ne.s32.totalorder %s509_s4, %s350_s17  ;;  %p354_p0 = scmp.lt.u32.totalorder %s350_s17, %s509_s4 }
 0x3e9   :  { %p356_p1 = pnand %p354_p0, %p351_p13 }
 0x3eb   :  { %359 = shalt.err (!%p356_p1)
}
 0x3ec   :  { %255 = dma.vmem_to_hbm [thread:$0]  %s253_s12, 16, %s509_s4, [#allocation7]  }
 0x3ed   :  { %s415_s23 = smov [#allocation8]  }
 0x3ee   :  { %s262_s24 = sshll.u32 %s415_s23, 4  ;;  %s263_s24 = int_to_ptr.vmem [resolvable:$true] %s262_s24 }
 0x3ef   :  { %s360_s25 = scalar_lea.vmem %s263_s24, 16  ;;  %s364_s26 = scalar_lea.vmem %s263_s24, 32 }
 0x3f0   :  { %p361_p2 = scmp.ne.s32.totalorder %s263_s24, %s360_s25  ;;  %p365_p3 = scmp.lt.s32.totalorder %s263_s24, %s263_s24 }
 0x3f1   :  { %p366_p4 = scmp.lt.s32.totalorder %s364_s26, %s360_s25 }
 0x3f3   :  { %p367_p5 = por %p366_p4, %p365_p3 }
 0x3f5   :  { %p368_p6 = pnand %p367_p5, %p361_p2 }
 0x3f7   :  { %371 = shalt.err (!%p368_p6)
}
 0x3f8   :  { %s372_s29 = scalar_lea.hbm %s510_s5, 16 }
 0x3f9   :  { %p373_p7 = scmp.ne.s32.totalorder %s510_s5, %s372_s29  ;;  %p376_p8 = scmp.lt.u32.totalorder %s372_s29, %s510_s5 }
 0x3fb   :  { %p378_p9 = pnand %p376_p8, %p373_p7 }
 0x3fd   :  { %381 = shalt.err (!%p378_p9)
}
 0x3fe   :  { %265 = dma.vmem_to_hbm [thread:$0]  %s263_s24, 16, %s510_s5, [#allocation7]   ;;  %vm232_vm5 = vcmask 0  }
 0x3ff   :  { %s416_s8 = smov [#allocation5]  }
 0x400   :  { %s242_s9 = sshll.u32 %s416_s8, 4  ;;  %s243_s9 = int_to_ptr.vmem [resolvable:$true] %s242_s9 }
 0x401   :  { %s382_s11 = scalar_lea.vmem %s243_s9, 16  ;;  %s386_s12 = scalar_lea.vmem %s243_s9, 32 }
 0x402   :  { %p383_p10 = scmp.ne.s32.totalorder %s243_s9, %s382_s11  ;;  %p387_p11 = scmp.lt.s32.totalorder %s243_s9, %s243_s9 }
 0x403   :  { %p388_p12 = scmp.lt.s32.totalorder %s386_s12, %s382_s11 }
 0x405   :  { %p389_p13 = por %p388_p12, %p387_p11 }
 0x407   :  { %p390_p0 = pnand %p389_p13, %p383_p10 }
 0x471   :  { %v223_v35 = vpop.xlane.xlu1 %222 }
 0x472   :  { %v224_v36 = vrot.slane %v223_v35, 4 }
 0x474   :  { %v225_v37 = vadd.f32 %v224_v36, %v223_v35 }
 0x476   :  { %v226_v38 = vrot.slane %v225_v37, 2 }
 0x478   :  { %v227_v39 = vadd.f32 %v226_v38, %v225_v37 }
 0x47a   :  { %v228_v40 = vrot.slane %v227_v39, 1 }
 0x47c   :  { %v229_v41 = vadd.f32 %v228_v40, %v227_v39 }
 0x47e   :  { %303 = vpush %v229_v41 }
 0x4af   :  { %s304_s10 = spop %303 }
 0x4b0   :  { %v231_v42 = vstv %s304_s10 }
 0x4b1   :  { %233 = vst.msk [vmem:[#allocation5] sm:$0x1] %vm232_vm5, %v231_v42 }
 0x4b2   :  { %393 = shalt.err (!%p390_p0)
}
 0x4b3   :  { %s394_s14 = scalar_lea.hbm %s508_s3, 16 }
 0x4b4   :  { %p395_p1 = scmp.ne.s32.totalorder %s508_s3, %s394_s14  ;;  %p398_p2 = scmp.lt.u32.totalorder %s394_s14, %s508_s3 }
 0x4b6   :  { %p400_p3 = pnand %p398_p2, %p395_p1 }
 0x4b8   :  { %403 = shalt.err (!%p400_p3)
}
 0x4b9   :  { %245 = dma.vmem_to_hbm [thread:$0]  %s243_s9, 16, %s508_s3, [#allocation4]  }
 0x4ba   :  { %406 = dma.done.wait [#allocation4], 16  }
 0x4bb   :  { %407 = vsyncadd [#allocation4], 4294967280 }
 0x4bc   :  { %408 = dma.done.wait [#allocation7], 32  }
 0x4bd   :  { %409 = vsyncadd [#allocation7], 4294967264 }
 0x4be   :  { %275 = vsyncpa [#allocation3], 1 }
 0x4bf   :  { %276 = vsyncpa [#allocation4], 1 }
 0x4c0   :  { %277 = vsyncpa [#allocation7], 1 }

</bundles_post_ra>
